<compile_context>
chip_gen: v6e
topology: v6e:2x2x1
jax: 0.10.0
libtpu: 0.0.40
codegen_flags: <defaults>
</compile_context>

<pallas_src>
import functools

import jax
import jax.numpy as jnp
from jax.experimental import pallas as pl
from jax.experimental.pallas import tpu as pltpu

BN_EPS = 1e-5
LANE = 128


def _round_up(x, m=LANE):
    return ((x + m - 1) // m) * m


def _generative_kernel(labels_ref, eps_ref, w1_ref, affine_ref, w2_ref,
                       out_ref, *, noise_dim):
    batch = eps_ref.shape[0]
    kp = eps_ref.shape[1]          # padded fc1 input width (noise + classes)
    hp = w1_ref.shape[1]           # padded hidden dim
    fp = w2_ref.shape[1]           # padded feature dim

    # Build z = concat(eps, one_hot(labels)) fully in-register:
    #   lanes [0, noise_dim)          -> eps
    #   lane  (noise_dim + label)     -> 1.0
    #   all other lanes               -> 0.0  (inert: matching w1 rows are zero)
    lbl = labels_ref[...]                                          # [B, 1] int32
    lane = jax.lax.broadcasted_iota(jnp.int32, (batch, kp), 1)
    onehot = (lane == (lbl + noise_dim)).astype(jnp.float32)       # [B, Kp]
    z = jnp.where(lane < noise_dim, eps_ref[...], onehot)          # [B, Kp] f32

    # fc1: single MXU matmul over the coalesced weight slab.  Bias omitted:
    # it is cancelled exactly by the training-mode BatchNorm that follows.
    # bf16 operands, f32 accumulation.
    h = jnp.dot(z.astype(jnp.bfloat16), w1_ref[...],
                preferred_element_type=jnp.float32)                # [B, Hp] f32

    # BatchNorm1d (training mode: biased batch stats) folded into one
    # scale/shift pass, then ReLU.  All elementwise math stays f32.
    mean = jnp.mean(h, axis=0, keepdims=True)                      # [1, Hp]
    xc = h - mean
    var = jnp.mean(xc * xc, axis=0, keepdims=True)
    gamma = affine_ref[0:1, :hp]
    beta = affine_ref[1:2, :hp]
    scale = gamma * jax.lax.rsqrt(var + BN_EPS)                    # EUP rsqrt
    h_act = jnp.maximum(xc * scale + beta, 0.0)

    # fc: Linear(hidden -> feature), bf16 operands, f32 accumulation.
    b2 = affine_ref[2:3, :fp]
    out_ref[...] = (jnp.dot(h_act.astype(jnp.bfloat16), w2_ref[...],
                            preferred_element_type=jnp.float32)
                    + b2).astype(out_ref.dtype)


def generative_forward(labels, eps_full, params, noise_dim):
    """Run the generator forward pass.

    labels:   int [B]
    eps_full: f32 [B, Kp]  (only lanes [0, noise_dim) are consumed; Kp is the
                            lane-padded fc1 input width == params['w1'].shape[0])
    Returns the LANE-PADDED output [B, Fp] (Fp = round128(feature_dim)); the
    padding columns are exactly zero.  No post-kernel slice is performed.
    """
    batch = eps_full.shape[0]
    fp = params["w2"].shape[1]                 # padded feature dim (lane-dense)

    labels2d = labels.astype(jnp.int32).reshape(batch, 1)
    kernel = functools.partial(_generative_kernel, noise_dim=noise_dim)

    vmem_spec = pl.BlockSpec(memory_space=pltpu.MemorySpace.VMEM)
    return pl.pallas_call(
        kernel,
        out_shape=jax.ShapeDtypeStruct((batch, fp), jnp.float32),
        in_specs=[vmem_spec] * 5,
        out_specs=vmem_spec,
    )(labels2d, eps_full, params["w1"], params["affine"], params["w2"])


def init_params(key, noise_dim, num_classes, hidden_dim, feature_dim):
    """PyTorch-Linear-like init, stored pre-padded to 128-lane widths.

    Weights are stored bf16 (MXU operands); the affine slab stays f32.
    Padded rows/columns are zero and gamma is zero on padded hidden columns,
    so all padding is inert end-to-end.
    """
    d_in = noise_dim + num_classes
    kp = _round_up(d_in)
    hp = _round_up(hidden_dim)
    fp = _round_up(feature_dim)
    slab_w = max(hp, fp)

    k1, k3, k4 = jax.random.split(key, 3)
    lim1 = 1.0 / jnp.sqrt(d_in)
    lim2 = 1.0 / jnp.sqrt(hidden_dim)

    w1_val = jax.random.uniform(k1, (d_in, hidden_dim), jnp.float32, -lim1, lim1)
    w1 = jnp.zeros((kp, hp), jnp.float32).at[:d_in, :hidden_dim].set(w1_val)

    w2_val = jax.random.uniform(k3, (hidden_dim, feature_dim), jnp.float32,
                                -lim2, lim2)
    w2 = jnp.zeros((hp, fp), jnp.float32).at[:hidden_dim, :feature_dim].set(w2_val)

    b2 = jax.random.uniform(k4, (feature_dim,), jnp.float32, -lim2, lim2)

    # Coalesced per-column params: row 0 = gamma, row 1 = beta, row 2 = b2.
    affine = jnp.zeros((8, slab_w), jnp.float32)
    affine = affine.at[0, :hidden_dim].set(1.0)      # gamma
    affine = affine.at[2, :feature_dim].set(b2)      # fc bias
    # beta (row 1) stays zero; padded columns stay zero so they are inert.

    # NOTE: fc1 bias is intentionally not created — training-mode BatchNorm
    # cancels it exactly.
    return {"w1": w1.astype(jnp.bfloat16),
            "w2": w2.astype(jnp.bfloat16),
            "affine": affine}


def reference_forward(labels, eps_full, params, noise_dim, num_classes,
                      hidden_dim, feature_dim):
    """Pure-JAX reference of the original module math.

    Mirrors the kernel's precision choices (bf16 MXU operands, f32
    accumulation / elementwise) so the comparison isolates the Pallas lowering.
    """
    d_in = noise_dim + num_classes
    w1 = params["w1"][:d_in, :hidden_dim].astype(jnp.float32)   # bf16-rounded
    w2 = params["w2"][:hidden_dim, :feature_dim].astype(jnp.float32)
    gamma = params["affine"][0, :hidden_dim]
    beta = params["affine"][1, :hidden_dim]
    b2 = params["affine"][2, :feature_dim]

    eps = eps_full[:, :noise_dim]
    y = jax.nn.one_hot(labels, num_classes, dtype=jnp.float32)
    z = jnp.concatenate([eps, y], axis=1)
    z = z.astype(jnp.bfloat16).astype(jnp.float32)              # operand rounding
    h = z @ w1                                  # (fc1 bias cancelled by BN below)
    mean = h.mean(0, keepdims=True)
    var = ((h - mean) ** 2).mean(0, keepdims=True)
    h = (h - mean) / jnp.sqrt(var + BN_EPS)
    h = jnp.maximum(h * gamma + beta, 0.0)
    h = h.astype(jnp.bfloat16).astype(jnp.float32)              # operand rounding
    return h @ w2 + b2


if __name__ == "__main__":
    noise_dim = 32
    num_classes = 10
    hidden_dim = 64
    feature_dim = 32
    batch = 8

    key = jax.random.PRNGKey(0)
    k_params, k_labels, k_eps = jax.random.split(key, 3)

    params = init_params(k_params, noise_dim, num_classes, hidden_dim,
                         feature_dim)
    kp = params["w1"].shape[0]                 # padded fc1 input width
    fp = params["w2"].shape[1]                 # padded feature width

    labels = jax.random.randint(k_labels, (batch,), 0, num_classes,
                                dtype=jnp.int32)
    # Noise is supplied lane-padded; only lanes [0, noise_dim) are consumed.
    eps_full = jax.random.uniform(k_eps, (batch, kp), jnp.float32)

    out = generative_forward(labels, eps_full, params, noise_dim)
    out = jax.block_until_ready(out)

    ref = reference_forward(labels, eps_full, params, noise_dim, num_classes,
                            hidden_dim, feature_dim)

    assert out.shape == (batch, fp)
    # Padding columns must be exactly zero (documented contract).
    assert jnp.all(out[:, feature_dim:] == 0.0)
    assert jnp.allclose(out[:, :feature_dim], ref, atol=5e-3, rtol=5e-3)

    print("KERNEL_OK")
</pallas_src>

<mosaic_0001>
module attributes {stable_mosaic.version = 11 : i64} {
  func.func @_generative_kernel(%arg0: memref<8x1xi32, #tpu.memory_space<vmem>>, %arg1: memref<8x128xf32, #tpu.memory_space<vmem>>, %arg2: memref<128x128xbf16, #tpu.memory_space<vmem>>, %arg3: memref<8x128xf32, #tpu.memory_space<vmem>>, %arg4: memref<128x128xbf16, #tpu.memory_space<vmem>>, %arg5: memref<8x128xf32, #tpu.memory_space<vmem>>) attributes {dimension_semantics = [], scalar_prefetch = 0 : i64, scratch_operands = 0 : i64, tpu.core_type = #tpu.core_type<tc>} {
    %c0 = arith.constant 0 : index
    %c0_0 = arith.constant 0 : index
    %0 = vector.load %arg0[%c0, %c0_0] : memref<8x1xi32, #tpu.memory_space<vmem>>, vector<8x1xi32>
    %1 = tpu.iota {dimensions = array<i32: 1>} : vector<8x128xi32>
    %c32_i32 = arith.constant 32 : i32
    %2 = vector.broadcast %c32_i32 : i32 to vector<8x1xi32>
    %3 = arith.addi %0, %2 : vector<8x1xi32>
    %4 = vector.broadcast %3 : vector<8x1xi32> to vector<8x128xi32>
    %5 = arith.cmpi eq, %1, %4 : vector<8x128xi32>
    %6 = arith.extui %5 : vector<8x128xi1> to vector<8x128xi32>
    %7 = arith.sitofp %6 : vector<8x128xi32> to vector<8x128xf32>
    %c32_i32_1 = arith.constant 32 : i32
    %8 = vector.broadcast %c32_i32_1 : i32 to vector<8x128xi32>
    %9 = arith.cmpi slt, %1, %8 : vector<8x128xi32>
    %c0_2 = arith.constant 0 : index
    %c0_3 = arith.constant 0 : index
    %10 = vector.load %arg1[%c0_2, %c0_3] : memref<8x128xf32, #tpu.memory_space<vmem>>, vector<8x128xf32>
    %11 = arith.select %9, %10, %7 : vector<8x128xi1>, vector<8x128xf32>
    %12 = arith.truncf %11 : vector<8x128xf32> to vector<8x128xbf16>
    %c0_4 = arith.constant 0 : index
    %c0_5 = arith.constant 0 : index
    %13 = vector.load %arg2[%c0_4, %c0_5] : memref<128x128xbf16, #tpu.memory_space<vmem>>, vector<128x128xbf16>
    %cst = arith.constant dense<0.000000e+00> : vector<8x128xf32>
    %14 = tpu.matmul %12, %13, %cst {dimension_numbers = #tpu.dot_dimension_numbers<[1], [0], [0], [1], [0, 0, 1, 1], [], []>} : vector<8x128xbf16>, vector<128x128xbf16>, vector<8x128xf32> -> vector<8x128xf32>
    %cst_6 = arith.constant dense<0.000000e+00> : vector<128xf32>
    %15 = vector.multi_reduction <add>, %14, %cst_6 [0] : vector<8x128xf32> to vector<128xf32>
    %16 = vector.shape_cast %15 : vector<128xf32> to vector<1x128xf32>
    %cst_7 = arith.constant 8.000000e+00 : f32
    %17 = vector.broadcast %cst_7 : f32 to vector<1x128xf32>
    %18 = arith.divf %16, %17 : vector<1x128xf32>
    %19 = vector.broadcast %18 : vector<1x128xf32> to vector<8x128xf32>
    %20 = arith.subf %14, %19 : vector<8x128xf32>
    %21 = arith.mulf %20, %20 : vector<8x128xf32>
    %cst_8 = arith.constant dense<0.000000e+00> : vector<128xf32>
    %22 = vector.multi_reduction <add>, %21, %cst_8 [0] : vector<8x128xf32> to vector<128xf32>
    %23 = vector.shape_cast %22 : vector<128xf32> to vector<1x128xf32>
    %cst_9 = arith.constant 8.000000e+00 : f32
    %24 = vector.broadcast %cst_9 : f32 to vector<1x128xf32>
    %25 = arith.divf %23, %24 : vector<1x128xf32>
    %c0_10 = arith.constant 0 : index
    %c0_11 = arith.constant 0 : index
    %26 = vector.load %arg3[%c0_10, %c0_11] : memref<8x128xf32, #tpu.memory_space<vmem>>, vector<1x128xf32>
    %c1 = arith.constant 1 : index
    %c0_12 = arith.constant 0 : index
    %27 = vector.load %arg3[%c1, %c0_12] : memref<8x128xf32, #tpu.memory_space<vmem>>, vector<1x128xf32>
    %cst_13 = arith.constant 9.99999974E-6 : f32
    %28 = vector.broadcast %cst_13 : f32 to vector<1x128xf32>
    %29 = arith.addf %25, %28 : vector<1x128xf32>
    %30 = math.rsqrt %29 : vector<1x128xf32>
    %31 = arith.mulf %26, %30 : vector<1x128xf32>
    %32 = vector.broadcast %31 : vector<1x128xf32> to vector<8x128xf32>
    %33 = arith.mulf %20, %32 : vector<8x128xf32>
    %34 = vector.broadcast %27 : vector<1x128xf32> to vector<8x128xf32>
    %35 = arith.addf %33, %34 : vector<8x128xf32>
    %cst_14 = arith.constant 0.000000e+00 : f32
    %36 = vector.broadcast %cst_14 : f32 to vector<8x128xf32>
    %37 = arith.maximumf %35, %36 : vector<8x128xf32>
    %c2 = arith.constant 2 : index
    %c0_15 = arith.constant 0 : index
    %38 = vector.load %arg3[%c2, %c0_15] : memref<8x128xf32, #tpu.memory_space<vmem>>, vector<1x128xf32>
    %39 = arith.truncf %37 : vector<8x128xf32> to vector<8x128xbf16>
    %c0_16 = arith.constant 0 : index
    %c0_17 = arith.constant 0 : index
    %40 = vector.load %arg4[%c0_16, %c0_17] : memref<128x128xbf16, #tpu.memory_space<vmem>>, vector<128x128xbf16>
    %cst_18 = arith.constant dense<0.000000e+00> : vector<8x128xf32>
    %41 = tpu.matmul %39, %40, %cst_18 {dimension_numbers = #tpu.dot_dimension_numbers<[1], [0], [0], [1], [0, 0, 1, 1], [], []>} : vector<8x128xbf16>, vector<128x128xbf16>, vector<8x128xf32> -> vector<8x128xf32>
    %42 = vector.broadcast %38 : vector<1x128xf32> to vector<8x128xf32>
    %43 = arith.addf %41, %42 : vector<8x128xf32>
    %c0_19 = arith.constant 0 : index
    %c0_20 = arith.constant 0 : index
    %44 = vector.load %arg5[%c0_19, %c0_20] : memref<8x128xf32, #tpu.memory_space<vmem>>, vector<8x128xf32>
    tpu.vector_store %arg5[%c0_19, %c0_20], %43 {strides = array<i32>} : memref<8x128xf32, #tpu.memory_space<vmem>>, vector<8x128xf32>,
    return
  }
}

</mosaic_0001>

<bundles_post_ra>
// kernel: tpu_custom_call.1
= control target key start
LH: loop header
LB: loop body
LE: loop exit
PB: predicated region body
PF: predicated region fallthrough
CT: control target
= control target key end

     0   :  { %10 = vsyncpa [#allocation3], 0  ;;  %s587_s0 = inlined_call_operand.vmem [shape: s32[8,1], index: 0, kind: input, shape index: {}]   ;;  %s588_s1 = inlined_call_operand.vmem [shape: f32[8,128], index: 1, kind: input, shape index: {}]   ;;  %s589_s2 = inlined_call_operand.hbm [shape: bf16[128,128], index: 2, kind: input, shape index: {}]   ;;  %s590_s3 = inlined_call_operand.hbm [shape: f32[8,128], index: 3, kind: input, shape index: {}]   ;;  %s591_s4 = inlined_call_operand.hbm [shape: bf16[128,128], index: 4, kind: input, shape index: {}]   ;;  %s592_s5 = inlined_call_operand.hbm [shape: f32[8,128], index: 5, kind: output, shape index: {}]  }
   0x1   :  { %11 = vsyncpa [#allocation6], 0 }
   0x2   :  { %12 = vsyncpa [#allocation4], 0  ;;  %s530_s18 = smov [#allocation5]   ;;  %s531_s20 = smov [#allocation2]  }
   0x3   :  { %s35_s19 = sshll.u32 %s530_s18, 4  ;;  %s22_s21 = sshll.u32 %s531_s20, 4  ;;  %s36_s19 = int_to_ptr.vmem [resolvable:$true] %s35_s19  ;;  %s23_s21 = int_to_ptr.vmem [resolvable:$true] %s22_s21 }
   0x4   :  { %s452_s22 = scalar_lea.vmem %s36_s19, 128  ;;  %p457_p1 = scmp.lt.s32.totalorder %s36_s19, %s36_s19 }
   0x5   :  { %p453_p0 = scmp.ne.s32.totalorder %s36_s19, %s452_s22  ;;  %p458_p2 = scmp.lt.s32.totalorder %s452_s22, %s452_s22 }
   0x7   :  { %p459_p3 = por %p458_p2, %p457_p1 }
   0x9   :  { %p460_p4 = pnand %p459_p3, %p453_p0 }
   0xb   :  { %463 = shalt.err (!%p460_p4)
}
   0xc   :  { %38 = dma.hbm_to_vmem [thread:$0]  %s590_s3, 128, %s36_s19, [#allocation6]  }
   0xd   :  { %s472_s25 = scalar_lea.vmem %s23_s21, 1024  ;;  %p477_p6 = scmp.lt.s32.totalorder %s23_s21, %s23_s21 }
   0xe   :  { %p473_p5 = scmp.ne.s32.totalorder %s23_s21, %s472_s25  ;;  %p478_p7 = scmp.lt.s32.totalorder %s472_s25, %s472_s25 }
  0x10   :  { %p479_p8 = por %p478_p7, %p477_p6 }
  0x12   :  { %p480_p9 = pnand %p479_p8, %p473_p5 }
  0x14   :  { %483 = shalt.err (!%p480_p9)
}
  0x15   :  { %s532_s26 = smov 64   ;;  %s533_s27 = smov 4  }
  0x16   :  { %28 = dma.hbm_to_vmem [thread:$0]  %s589_s2, 1024, %s23_s21, [#allocation3], %s532_s26, %s532_s26, %s533_s27  }
  0x17   :  { %s534_s30 = smov [#allocation7]  }
  0x18   :  { %s44_s6 = sshll.u32 %s534_s30, 4  ;;  %s45_s6 = int_to_ptr.vmem [resolvable:$true] %s44_s6 }
  0x19   :  { %s492_s7 = scalar_lea.vmem %s45_s6, 1024  ;;  %p497_p11 = scmp.lt.s32.totalorder %s45_s6, %s45_s6 }
  0x1a   :  { %p493_p10 = scmp.ne.s32.totalorder %s45_s6, %s492_s7  ;;  %p498_p12 = scmp.lt.s32.totalorder %s492_s7, %s492_s7 }
  0x1c   :  { %p499_p13 = por %p498_p12, %p497_p11 }
  0x1e   :  { %p500_p0 = pnand %p499_p13, %p493_p10 }
  0x20   :  { %503 = shalt.err (!%p500_p0)
}
  0x21   :  { %50 = dma.hbm_to_vmem [thread:$0]  %s591_s4, 1024, %s45_s6, [#allocation6], %s532_s26, %s532_s26, %s533_s27  }
  0x22   :  { %524 = dma.done.wait [#allocation3], 1024  }
  0x23   :  { %525 = vsyncadd [#allocation3], 4294966272 }
  0x24   :  { %526 = dma.done.wait [#allocation6], 1152  }
  0x25   :  { %527 = vsyncadd [#allocation6], 4294966144  ;;  %v535_v0 = vmov 0   ;;  %v536_v1 = vmov 0.0   ;;  %v61_v2 = vld [vmem:[%s587_s0] sm:$0xff]  ;;  %v426_v4 = vld [vmem:[#allocation2 + $0x38] sm:$0xff]   ;;  %v62_v12 = vlaneseq }
  0x26   :  { %425 = vset.pattern.permute.xlu0 %v535_v0  ;;  %376 = vmatprep.subr.bf16.mxu0 %v536_v1  ;;  %v64_v3 = vadd.s32 32, %v61_v2  ;;  %v427_v5 = vld [vmem:[#allocation2 + $0x30] sm:$0xff]   ;;  %vm537_vm0 = vmmov 0   ;;  %v428_v6 = vld [vmem:[#allocation2 + $0x28] sm:$0xff]   ;;  %v429_v7 = vld [vmem:[#allocation2 + $0x20] sm:$0xff]  }
  0x27   :  { %396 = vmatprep.subr.bf16.mxu1 %v536_v1  ;;  %377 = vmatpush3.bf16.msra.mxu0 %v426_v4  ;;  %v430_v8 = vld [vmem:[#allocation2 + $0x18] sm:$0xff]   ;;  %v431_v9 = vld [vmem:[#allocation2 + $0x10] sm:$0xff]   ;;  %v432_v10 = vld [vmem:[#allocation2 + $0x8] sm:$0xff]   ;;  %v63_v13 = vand.u32 127, %v62_v12  ;;  %v202_v48 = vshrl.u32 %v62_v12, 7 }
  0x28   :  { %66 = vperm.xlu0 %425, %v64_v3   ;;  %378 = vmatprep.subr.bf16.mxu0 %v536_v1  ;;  %v433_v11 = vld [vmem:[#allocation2] sm:$0xff]   ;;  %v435_v20 = vld [vmem:[#allocation7 + $0x30] sm:$0xff]   ;;  %v436_v21 = vld [vmem:[#allocation7 + $0x28] sm:$0xff]  }
  0x29   :  { %392 = vmatprep.mubr.msk.bf16.mxu0 %vm537_vm0, %v536_v1  ;;  %412 = vmatprep.mubr.msk.bf16.mxu1 %vm537_vm0, %v536_v1  ;;  %vm71_vm1 = vcmp.lt.s32.totalorder %v63_v13, 32  ;;  %v72_v14 = vld [vmem:[%s588_s1] sm:$0xff]  ;;  %v437_v22 = vld [vmem:[#allocation7 + $0x20] sm:$0xff]   ;;  %v439_v24 = vld [vmem:[#allocation7 + $0x10] sm:$0xff]   ;;  %v203_v50 = vsub.s32 0, %v202_v48  ;;  %s538_s1 = smov [#allocation8]  }
  0x2a   :  { %v434_v19 = vld [vmem:[#allocation7 + $0x38] sm:$0xff]   ;;  %v440_v25 = vld [vmem:[#allocation7 + $0x8] sm:$0xff]   ;;  %v441_v26 = vld [vmem:[#allocation7] sm:$0xff]   ;;  %s329_s10 = sshll.u32 %s538_s1, 4  ;;  %s330_s10 = int_to_ptr.vmem [resolvable:$true] %s329_s10 }
  0x2b   :  { %379 = vmatpush3.bf16.msra.mxu0 %v427_v5  ;;  %397 = vmatpush3.bf16.msra.mxu1 %v434_v19  ;;  %v438_v23 = vld [vmem:[#allocation7 + $0x18] sm:$0xff]   ;;  %s504_s11 = scalar_lea.vmem %s330_s10, 128  ;;  %p509_p2 = scmp.lt.s32.totalorder %s330_s10, %s330_s10 }
  0x2c   :  { %380 = vmatprep.subr.bf16.mxu0 %v536_v1  ;;  %398 = vmatprep.subr.bf16.mxu1 %v536_v1  ;;  %v196_v49 = vld [vmem:[#allocation5] sm:$0x1]  ;;  %v348_v54 = vld [vmem:[#allocation5 + $0x1] ss:$0 sm:$0xff]  ;;  %v349_v59 = vld [vmem:[#allocation5 + $0x2] ss:$0 sm:$0xff]  ;;  %p505_p1 = scmp.ne.s32.totalorder %s330_s10, %s504_s11  ;;  %p510_p3 = scmp.lt.s32.totalorder %s504_s11, %s504_s11 }
  0x2e   :  { %p511_p4 = por %p510_p3, %p509_p2 }
  0x2f   :  { %381 = vmatpush3.bf16.msra.mxu0 %v428_v6  ;;  %399 = vmatpush3.bf16.msra.mxu1 %v435_v20 }
  0x30   :  { %382 = vmatprep.subr.bf16.mxu0 %v536_v1  ;;  %400 = vmatprep.subr.bf16.mxu1 %v536_v1  ;;  %p512_p5 = pnand %p511_p4, %p505_p1 }
  0x33   :  { %383 = vmatpush3.bf16.msra.mxu0 %v429_v7  ;;  %401 = vmatpush3.bf16.msra.mxu1 %v436_v21 }
  0x34   :  { %384 = vmatprep.subr.bf16.mxu0 %v536_v1  ;;  %402 = vmatprep.subr.bf16.mxu1 %v536_v1 }
  0x37   :  { %385 = vmatpush3.bf16.msra.mxu0 %v430_v8  ;;  %403 = vmatpush3.bf16.msra.mxu1 %v437_v22 }
  0x38   :  { %386 = vmatprep.subr.bf16.mxu0 %v536_v1  ;;  %404 = vmatprep.subr.bf16.mxu1 %v536_v1 }
  0x3b   :  { %387 = vmatpush3.bf16.msra.mxu0 %v431_v9  ;;  %405 = vmatpush3.bf16.msra.mxu1 %v438_v23 }
  0x3c   :  { %388 = vmatprep.subr.bf16.mxu0 %v536_v1  ;;  %406 = vmatprep.subr.bf16.mxu1 %v536_v1 }
  0x3f   :  { %389 = vmatpush3.bf16.msra.mxu0 %v432_v10  ;;  %407 = vmatpush3.bf16.msra.mxu1 %v439_v24 }
  0x40   :  { %390 = vmatprep.subr.bf16.mxu0 %v536_v1  ;;  %408 = vmatprep.subr.bf16.mxu1 %v536_v1 }
  0x43   :  { %391 = vmatpush3.bf16.msra.mxu0 %v433_v11  ;;  %409 = vmatpush3.bf16.msra.mxu1 %v440_v25 }
  0x44   :  { %410 = vmatprep.subr.bf16.mxu1 %v536_v1 }
  0x47   :  { %411 = vmatpush3.bf16.msra.mxu1 %v441_v26 }
  0xa3   :  { %v67_v15 = vpop.permute.xlu0 %66 }
  0xa4   :  { %vm68_vm2 = vcmp.eq.s32.totalorder %v63_v13, %v67_v15 }
  0xa5   :  { %v339_v16 = vsel %vm68_vm2, 1.0, %v536_v1 }
  0xa6   :  { %v73_v17 = vsel %vm71_vm1, %v72_v14, %v339_v16 }
  0xa7   :  { %v74_v18 = vpack.c.bf16 %v73_v17, %v73_v17 }
  0xa9   :  { %393 = vmatmul.mubr.bf16.vlgmr.msra.gmra.mxu0 %v74_v18 }
 0x169   :  { %v173_v27 = vpop.f32.mrf.mxu0 }
 0x16a   :  { %v179_v28 = vrot.slane %v173_v27, 4 }
 0x16b   :  { %v394_v29 = vpop.f32.mrf.mxu0 }
 0x16c   :  { %v180_v30 = vadd.f32 %v179_v28, %v173_v27 }
 0x16d   :  { %v176_v31 = vpop.f32.mrf.mxu0 }
 0x16e   :  { %v181_v32 = vrot.slane %v180_v30, 2 }
 0x16f   :  { %v395_v33 = vpop.f32.mrf.mxu0 }
 0x170   :  { %v182_v34 = vadd.f32 %v181_v32, %v180_v30 }
 0x172   :  { %v183_v35 = vrot.slane %v182_v34, 1 }
 0x174   :  { %v184_v36 = vadd.f32 %v183_v35, %v182_v34 }
 0x176   :  { %v186_v37 = vmul.f32 0.125, %v184_v36 }
 0x178   :  { %v187_v38 = vsub.f32 %v173_v27, %v186_v37 }
 0x17a   :  { %v188_v39 = vmul.f32 %v187_v38, %v187_v38 }
 0x17c   :  { %v189_v40 = vrot.slane %v188_v39, 4 }
 0x17e   :  { %v190_v41 = vadd.f32 %v189_v40, %v188_v39 }
 0x180   :  { %v191_v42 = vrot.slane %v190_v41, 2 }
 0x182   :  { %v192_v43 = vadd.f32 %v191_v42, %v190_v41 }
 0x184   :  { %v193_v44 = vrot.slane %v192_v43, 1 }
 0x186   :  { %v194_v45 = vadd.f32 %v193_v44, %v192_v43 }
 0x188   :  { %v195_v46 = vmul.f32 0.125, %v194_v45 }
 0x18a   :  { %v198_v47 = vadd.f32 1e-05, %v195_v46 }
 0x18c   :  { %442 = vrsqrt.f32 %v198_v47 }
 0x199   :  { %v443_v51 = vpop.eup %442 }
 0x19a   :  { %v200_v52 = vmul.f32 %v443_v51, %v196_v49 }
 0x19c   :  { %v204_v53 = vrot.slane %v200_v52, %v203_v50 }
 0x19e   :  { %v205_v55 = vmul.f32 %v204_v53, %v187_v38 }
 0x1a0   :  { %v210_v56 = vadd.f32 %v348_v54, %v205_v55 }
 0x1a2   :  { %v211_v57 = vmax.f32 %v210_v56, 0.0 }
 0x1a4   :  { %v213_v58 = vpack.c.bf16 %v211_v57, %v211_v57 }
 0x1a6   :  { %413 = vmatmul.mubr.bf16.vlgmr.msra.gmra.mxu1 %v213_v58 }
 0x266   :  { %v316_v60 = vpop.f32.mrf.mxu1 }
 0x267   :  { %v317_v61 = vadd.f32 %v349_v59, %v316_v60 }
 0x268   :  { %v414_v62 = vpop.f32.mrf.mxu1 }
 0x269   :  { %322 = vst [vmem:[#allocation8] sm:$0xff] %v317_v61 }
 0x26a   :  { %v319_v63 = vpop.f32.mrf.mxu1 }
 0x26b   :  { %515 = shalt.err (!%p512_p5)
}
 0x26c   :  { %332 = dma.vmem_to_hbm [thread:$0]  %s330_s10, 128, %s592_s5, [#allocation4]   ;;  %v415_v0 = vpop.f32.mrf.mxu1 }
 0x26d   :  { %528 = dma.done.wait [#allocation4], 128  }
 0x26e   :  { %529 = vsyncadd [#allocation4], 4294967168 }
 0x26f   :  { %336 = vsyncpa [#allocation3], 1 }
 0x270   :  { %337 = vsyncpa [#allocation6], 1 }
 0x271   :  { %338 = vsyncpa [#allocation4], 1 }

</bundles_post_ra>
